<compile_context>
chip_gen: v5e
topology: v5e:2x2
jax: 0.10.0
libtpu: 0.0.40
codegen_flags: <defaults>
</compile_context>

<pallas_src>
import functools

import jax
import jax.numpy as jnp
from jax.experimental import pallas as pl
from jax.experimental.pallas import tpu as pltpu

ALPHA = 0.5
BETA = 0.5

_LANES = 128
_SUBLANES = 8
# Target ~4 MiB per input tile: 2 inputs x 2 pipeline buffers x 4 MiB = 16 MiB,
# comfortably below the 32 MiB scoped-VMEM limit requested below (v7x has
# 64 MiB physical per TC; v5e's scoped default is only 16 MiB, hence explicit).
_TILE_BYTES = 4 * 1024 * 1024
_VMEM_LIMIT = 32 * 1024 * 1024
_X_PAD = -1e4  # sigmoid(-1e4) == 0.0 exactly in f32 (tanh form saturates)


def _round_up(x, m):
    return ((x + m - 1) // m) * m


def _cdiv(a, b):
    return -(-a // b)


def _num_tensorcores() -> int:
    """2 on chips exposing two TensorCores per device (v4/v5p/v7x class), else 1."""
    try:
        kind = jax.devices()[0].device_kind.lower()
    except Exception:
        return 1
    single_tc = ("v2", "v3", "v5e", "v5 lite", "v5lite", "v6e", "v6 lite", "v6lite")
    if any(tag in kind for tag in single_tc):
        return 1
    return 2


def _sigmoid1(x):
    # Single EUP push: 0.5*tanh(0.5*x) + 0.5  ==  1 / (1 + exp(-x)).
    return 0.5 * jnp.tanh(0.5 * x) + 0.5


def _fold(v, tm):
    """(tm, 128) -> (8, 128) partial sums using only vreg-batch VPU adds (no XLU)."""
    if tm % 64 == 0 and tm >= 128:
        # Two-level tree: 8 interleaved (8,128) accumulators, then combine once.
        # Critical path ~ tm/64 + 8 adds instead of a single tm/8-deep chain.
        return v.reshape(tm // 64, 8, _SUBLANES, _LANES).sum(axis=0).sum(axis=0)
    return v.reshape(tm // _SUBLANES, _SUBLANES, _LANES).sum(axis=0)


def _tversky_partial_kernel(x_ref, t_ref, o_ref, *, steps_per_split,
                            rows_valid, mask_start, mask_needed):
    """Grid = (split, step). Each step streams a (tm, 128) tile of logits and
    targets and accumulates [sum(p*t), sum(p), sum(t)] partials (folded to
    (8, 128)) into the per-split resident output block o_ref: (3, 8, 128)."""
    s = pl.program_id(0)
    k = pl.program_id(1)

    @pl.when(k == 0)
    def _():
        o_ref[...] = jnp.zeros_like(o_ref)

    x = x_ref[...].astype(jnp.float32)
    t = t_ref[...].astype(jnp.float32)
    tm = x.shape[0]

    def accumulate(p, tt):
        o_ref[0] += _fold(p * tt, tm)   # partial sum(p * t)
        o_ref[1] += _fold(p, tm)        # partial sum(p)
        o_ref[2] += _fold(tt, tm)       # partial sum(t)

    if not mask_needed:
        # Static fast path: every tile of this problem is fully in-bounds
        # (padding in the wrapper already neutralized the sub-(8*128) tail).
        accumulate(_sigmoid1(x), t)
        return

    blk = s * steps_per_split + k  # un-clamped logical block index

    @pl.when(blk < mask_start)
    def _():
        # Interior tile: unmasked fast path (no iota, no selects).
        accumulate(_sigmoid1(x), t)

    @pl.when(blk >= mask_start)
    def _():
        # Boundary tile (rows % tm != 0) or clamped-duplicate tile of an uneven
        # split: single row-level compare against the padded row count.
        # blk*tm ~ rows, far below int32 limits for any realistic n.
        row_ids = jax.lax.broadcasted_iota(jnp.int32, (tm, _LANES), 0)
        valid = (blk * tm + row_ids) < rows_valid
        # Keep jnp.where (true select): the out-of-bounds region of the block
        # holds stale/undefined VMEM data which may be NaN/Inf.
        p = jnp.where(valid, _sigmoid1(x), 0.0)
        tt = jnp.where(valid, t, 0.0)
        accumulate(p, tt)


@jax.jit
def tversky_loss(inputs, targets, smooth=1.0):
    """inputs: raw logits (any shape), targets: same shape (0/1 values)."""
    x = inputs.reshape(-1)
    t = targets.reshape(-1)
    n = x.shape[0]

    if n == 0:
        # TP = FP = FN = 0  ->  1 - smooth/smooth = 0
        return jnp.zeros((), jnp.float32)

    # Pad (only if needed) up to a multiple of 8*128 elements with neutral
    # values: sigmoid(_X_PAD) == 0 and t == 0, so padded slots contribute
    # nothing and need no in-kernel masking; this also keeps the
    # second-to-minor dim a multiple of 8.
    chunk = _SUBLANES * _LANES
    rem = n % chunk
    if rem:
        pad = chunk - rem
        x = jnp.pad(x, (0, pad), constant_values=_X_PAD)
        t = jnp.pad(t, (0, pad), constant_values=0)
        n_pad = n + pad
    else:
        n_pad = n

    rows = n_pad // _LANES
    x2 = x.reshape(rows, _LANES)
    t2 = t.reshape(rows, _LANES)

    # ~4 MiB per input tile (8192 rows f32, 16384 rows bf16), multiple of 8.
    itemsize = max(jnp.dtype(x2.dtype).itemsize, jnp.dtype(t2.dtype).itemsize)
    tm_max = max(_SUBLANES,
                 (_TILE_BYTES // (_LANES * itemsize)) // _SUBLANES * _SUBLANES)
    tm = min(tm_max, rows)            # rows and tm_max are multiples of 8

    total_steps = _cdiv(rows, tm)
    nsplits = _num_tensorcores()
    if total_steps < nsplits:
        nsplits = 1
    steps_per_split = _cdiv(total_steps, nsplits)
    last_block = total_steps - 1

    ragged = (rows % tm) != 0
    has_dup = (nsplits * steps_per_split) != total_steps
    mask_needed = ragged or has_dup
    mask_start = (rows // tm) if ragged else total_steps

    def in_map(s, k):
        # Clamp out-of-range blocks (uneven split); the kernel masks them out.
        return (jnp.minimum(s * steps_per_split + k, last_block), 0)

    in_spec = pl.BlockSpec((tm, _LANES), in_map)
    out_spec = pl.BlockSpec((3, _SUBLANES, _LANES), lambda s, k: (s, 0, 0))

    kernel = functools.partial(
        _tversky_partial_kernel,
        steps_per_split=steps_per_split,
        rows_valid=rows,
        mask_start=mask_start,
        mask_needed=mask_needed,
    )

    bytes_accessed = (x2.size * x2.dtype.itemsize
                      + t2.size * t2.dtype.itemsize
                      + nsplits * 3 * _SUBLANES * _LANES * 4)
    cost = pl.CostEstimate(flops=8 * n_pad, transcendentals=n_pad,
                           bytes_accessed=bytes_accessed)

    partials = pl.pallas_call(
        kernel,
        out_shape=jax.ShapeDtypeStruct((nsplits * 3, _SUBLANES, _LANES),
                                       jnp.float32),
        grid_spec=pltpu.PrefetchScalarGridSpec(
            num_scalar_prefetch=0,
            grid=(nsplits, steps_per_split),
            in_specs=[in_spec, in_spec],
            out_specs=out_spec,
        ),
        compiler_params=pltpu.CompilerParams(
            dimension_semantics=("parallel", "arbitrary"),
            vmem_limit_bytes=_VMEM_LIMIT,
        ),
        cost_estimate=cost,
    )(x2, t2)

    # Tiny epilogue in XLA: combine per-split (3, 8, 128) partials and apply
    # the Tversky formula.
    sums = jnp.sum(partials.reshape(nsplits, 3, _SUBLANES, _LANES),
                   axis=(0, 2, 3))
    s_pt, s_p, s_t = sums[0], sums[1], sums[2]
    TP = s_pt
    FP = s_p - s_pt            # sum((1 - t) * p)
    FN = s_t - s_pt            # sum(t * (1 - p))
    tversky = (TP + smooth) / (TP + ALPHA * FP + BETA * FN + smooth)
    return (1.0 - tversky).astype(jnp.float32)


def _tversky_ref(inputs, targets, smooth=1.0):
    p = jax.nn.sigmoid(inputs.reshape(-1).astype(jnp.float32))
    t = targets.reshape(-1).astype(jnp.float32)
    TP = jnp.sum(p * t)
    FP = jnp.sum((1.0 - t) * p)
    FN = jnp.sum(t * (1.0 - p))
    tversky = (TP + smooth) / (TP + ALPHA * FP + BETA * FN + smooth)
    return 1.0 - tversky


if __name__ == "__main__":
    key = jax.random.PRNGKey(0)
    k1, k2, k3, k4, k5, k6 = jax.random.split(key, 6)

    # 1) Typical segmentation use: logits + binary mask, NCHW, f32, aligned.
    B, C, H, W = 2, 4, 16, 16
    x1 = jax.random.normal(k1, (B, C, H, W), dtype=jnp.float32)
    y1 = (jax.random.uniform(k2, (B, C, H, W)) > 0.5).astype(jnp.float32)
    loss1 = jax.block_until_ready(tversky_loss(x1, y1))
    ref1 = _tversky_ref(x1, y1)
    assert jnp.allclose(loss1, ref1, atol=1e-4, rtol=1e-4), (loss1, ref1)

    # 2) Ragged (non-multiple-of-128) bf16 inputs: exercises neutral-value
    #    padding and the in-kernel f32 upcast.
    x2 = jax.random.normal(k3, (2, 3, 7, 9), dtype=jnp.bfloat16)
    y2 = (jax.random.uniform(k4, (2, 3, 7, 9)) > 0.5).astype(jnp.bfloat16)
    loss2 = jax.block_until_ready(tversky_loss(x2, y2))
    ref2 = _tversky_ref(x2, y2)
    assert jnp.allclose(loss2, ref2, atol=1e-4, rtol=1e-4), (loss2, ref2)

    # 3) Multi-tile case with a ragged last block: exercises the pl.when-gated
    #    row mask (and the 2-way parallel split on 2-TC chips).
    n3 = (8192 + 72) * 128
    x3 = jax.random.normal(k5, (n3,), dtype=jnp.float32)
    y3 = (jax.random.uniform(k6, (n3,)) > 0.5).astype(jnp.float32)
    loss3 = jax.block_until_ready(tversky_loss(x3, y3))
    ref3 = _tversky_ref(x3, y3)
    assert jnp.allclose(loss3, ref3, atol=1e-4, rtol=1e-4), (loss3, ref3)

    print("KERNEL_OK")
</pallas_src>

<mosaic_0001>
module attributes {stable_mosaic.version = 11 : i64} {
  func.func @_tversky_partial_kernel(%arg0: i32, %arg1: i32, %arg2: memref<16x128xf32, #tpu.memory_space<vmem>>, %arg3: memref<16x128xf32, #tpu.memory_space<vmem>>, %arg4: memref<3x8x128xf32, #tpu.memory_space<vmem>>) attributes {dimension_semantics = [#tpu.dimension_semantics<parallel>, #tpu.dimension_semantics<arbitrary>], iteration_bounds = array<i64: 1, 1>, scalar_prefetch = 0 : i64, scratch_operands = 0 : i64, tpu.core_type = #tpu.core_type<tc>, window_params = [{transform_indices = @transform_0, window_bounds = array<i64: 16, 128>}, {transform_indices = @transform_1, window_bounds = array<i64: 16, 128>}, {transform_indices = @transform_2, window_bounds = array<i64: 3, 8, 128>}]} {
    %c0_i32 = arith.constant 0 : i32
    %0 = arith.cmpi eq, %arg1, %c0_i32 : i32
    %1 = arith.extui %0 : i1 to i32
    %c0_i32_0 = arith.constant 0 : i32
    %2 = arith.cmpi ne, %1, %c0_i32_0 : i32
    scf.if %2 {
      %cst_25 = arith.constant 0.000000e+00 : f32
      %37 = vector.broadcast %cst_25 : f32 to vector<3x8x128xf32>
      %c0_26 = arith.constant 0 : index
      %c0_27 = arith.constant 0 : index
      %c0_28 = arith.constant 0 : index
      %38 = vector.load %arg4[%c0_26, %c0_27, %c0_28] : memref<3x8x128xf32, #tpu.memory_space<vmem>>, vector<3x8x128xf32>
      tpu.vector_store %arg4[%c0_26, %c0_27, %c0_28], %37 {strides = array<i32>} : memref<3x8x128xf32, #tpu.memory_space<vmem>>, vector<3x8x128xf32>,
    } else {
    }
    %c0 = arith.constant 0 : index
    %c0_1 = arith.constant 0 : index
    %3 = vector.load %arg2[%c0, %c0_1] : memref<16x128xf32, #tpu.memory_space<vmem>>, vector<16x128xf32>
    %c0_2 = arith.constant 0 : index
    %c0_3 = arith.constant 0 : index
    %4 = vector.load %arg3[%c0_2, %c0_3] : memref<16x128xf32, #tpu.memory_space<vmem>>, vector<16x128xf32>
    %cst = arith.constant 5.000000e-01 : f32
    %5 = vector.broadcast %cst : f32 to vector<16x128xf32>
    %6 = arith.mulf %5, %3 : vector<16x128xf32>
    %7 = math.tanh %6 : vector<16x128xf32>
    %cst_4 = arith.constant 5.000000e-01 : f32
    %8 = vector.broadcast %cst_4 : f32 to vector<16x128xf32>
    %9 = arith.mulf %8, %7 : vector<16x128xf32>
    %cst_5 = arith.constant 5.000000e-01 : f32
    %10 = vector.broadcast %cst_5 : f32 to vector<16x128xf32>
    %11 = arith.addf %9, %10 : vector<16x128xf32>
    %c0_6 = arith.constant 0 : index
    %c0_7 = arith.constant 0 : index
    %c0_8 = arith.constant 0 : index
    %12 = vector.load %arg4[%c0_6, %c0_7, %c0_8] : memref<3x8x128xf32, #tpu.memory_space<vmem>>, vector<1x8x128xf32>
    %13 = vector.shape_cast %12 : vector<1x8x128xf32> to vector<8x128xf32>
    %14 = arith.mulf %11, %4 : vector<16x128xf32>
    %15 = vector.shape_cast %14 : vector<16x128xf32> to vector<2x8x128xf32>
    %cst_9 = arith.constant dense<0.000000e+00> : vector<8x128xf32>
    %16 = vector.multi_reduction <add>, %15, %cst_9 [0] : vector<2x8x128xf32> to vector<8x128xf32>
    %17 = arith.addf %13, %16 : vector<8x128xf32>
    %c0_10 = arith.constant 0 : index
    %c0_11 = arith.constant 0 : index
    %c0_12 = arith.constant 0 : index
    %18 = vector.load %arg4[%c0_10, %c0_11, %c0_12] : memref<3x8x128xf32, #tpu.memory_space<vmem>>, vector<1x8x128xf32>
    %19 = vector.shape_cast %18 : vector<1x8x128xf32> to vector<8x128xf32>
    %20 = vector.shape_cast %17 : vector<8x128xf32> to vector<1x8x128xf32>
    tpu.vector_store %arg4[%c0_10, %c0_11, %c0_12], %20 {strides = array<i32>} : memref<3x8x128xf32, #tpu.memory_space<vmem>>, vector<1x8x128xf32>,
    %c1 = arith.constant 1 : index
    %c0_13 = arith.constant 0 : index
    %c0_14 = arith.constant 0 : index
    %21 = vector.load %arg4[%c1, %c0_13, %c0_14] : memref<3x8x128xf32, #tpu.memory_space<vmem>>, vector<1x8x128xf32>
    %22 = vector.shape_cast %21 : vector<1x8x128xf32> to vector<8x128xf32>
    %23 = vector.shape_cast %11 : vector<16x128xf32> to vector<2x8x128xf32>
    %cst_15 = arith.constant dense<0.000000e+00> : vector<8x128xf32>
    %24 = vector.multi_reduction <add>, %23, %cst_15 [0] : vector<2x8x128xf32> to vector<8x128xf32>
    %25 = arith.addf %22, %24 : vector<8x128xf32>
    %c1_16 = arith.constant 1 : index
    %c0_17 = arith.constant 0 : index
    %c0_18 = arith.constant 0 : index
    %26 = vector.load %arg4[%c1_16, %c0_17, %c0_18] : memref<3x8x128xf32, #tpu.memory_space<vmem>>, vector<1x8x128xf32>
    %27 = vector.shape_cast %26 : vector<1x8x128xf32> to vector<8x128xf32>
    %28 = vector.shape_cast %25 : vector<8x128xf32> to vector<1x8x128xf32>
    tpu.vector_store %arg4[%c1_16, %c0_17, %c0_18], %28 {strides = array<i32>} : memref<3x8x128xf32, #tpu.memory_space<vmem>>, vector<1x8x128xf32>,
    %c2 = arith.constant 2 : index
    %c0_19 = arith.constant 0 : index
    %c0_20 = arith.constant 0 : index
    %29 = vector.load %arg4[%c2, %c0_19, %c0_20] : memref<3x8x128xf32, #tpu.memory_space<vmem>>, vector<1x8x128xf32>
    %30 = vector.shape_cast %29 : vector<1x8x128xf32> to vector<8x128xf32>
    %31 = vector.shape_cast %4 : vector<16x128xf32> to vector<2x8x128xf32>
    %cst_21 = arith.constant dense<0.000000e+00> : vector<8x128xf32>
    %32 = vector.multi_reduction <add>, %31, %cst_21 [0] : vector<2x8x128xf32> to vector<8x128xf32>
    %33 = arith.addf %30, %32 : vector<8x128xf32>
    %c2_22 = arith.constant 2 : index
    %c0_23 = arith.constant 0 : index
    %c0_24 = arith.constant 0 : index
    %34 = vector.load %arg4[%c2_22, %c0_23, %c0_24] : memref<3x8x128xf32, #tpu.memory_space<vmem>>, vector<1x8x128xf32>
    %35 = vector.shape_cast %34 : vector<1x8x128xf32> to vector<8x128xf32>
    %36 = vector.shape_cast %33 : vector<8x128xf32> to vector<1x8x128xf32>
    tpu.vector_store %arg4[%c2_22, %c0_23, %c0_24], %36 {strides = array<i32>} : memref<3x8x128xf32, #tpu.memory_space<vmem>>, vector<1x8x128xf32>,
    return
  }
  func.func @transform_0(%arg0: i32, %arg1: i32) -> (i32, i32) {
    %c1_i32 = arith.constant 1 : i32
    %0 = arith.muli %arg0, %c1_i32 : i32
    %1 = arith.addi %0, %arg1 : i32
    %c0_i32 = arith.constant 0 : i32
    %2 = arith.minsi %1, %c0_i32 : i32
    %c0_i32_0 = arith.constant 0 : i32
    %c0_i32_1 = arith.constant 0 : i32
    return %2, %c0_i32_0 : i32, i32
  }
  func.func @transform_1(%arg0: i32, %arg1: i32) -> (i32, i32) {
    %c1_i32 = arith.constant 1 : i32
    %0 = arith.muli %arg0, %c1_i32 : i32
    %1 = arith.addi %0, %arg1 : i32
    %c0_i32 = arith.constant 0 : i32
    %2 = arith.minsi %1, %c0_i32 : i32
    %c0_i32_0 = arith.constant 0 : i32
    %c0_i32_1 = arith.constant 0 : i32
    return %2, %c0_i32_0 : i32, i32
  }
  func.func @transform_2(%arg0: i32, %arg1: i32) -> (i32, i32, i32) {
    %c0_i32 = arith.constant 0 : i32
    %c0_i32_0 = arith.constant 0 : i32
    %c0_i32_1 = arith.constant 0 : i32
    return %arg0, %c0_i32, %c0_i32_0 : i32, i32, i32
  }
}

</mosaic_0001>

<bundles_post_ra>
// kernel: tversky_loss.1
= control target key start
LH: loop header
LB: loop body
LE: loop exit
PB: predicated region body
PF: predicated region fallthrough
CT: control target
= control target key end

     0   :  { %s171_s0 = inlined_call_operand.vmem [shape: f32[16,128], index: 0, kind: input, shape index: {}]   ;;  %s172_s1 = inlined_call_operand.vmem [shape: f32[16,128], index: 1, kind: input, shape index: {}]   ;;  %s173_s2 = inlined_call_operand.vmem [shape: f32[3,8,128], index: 2, kind: output, shape index: {}]  }
   0x1   :  { %v82_v0 = vld [vmem:[%s171_s0] sm:$0xff]  ;;  %v83_v1 = vld [vmem:[%s171_s0 + $0x8] sm:$0xff] }
   0x2   :  { %v84_v2 = vld [vmem:[%s172_s1] sm:$0xff]  ;;  %v85_v3 = vld [vmem:[%s172_s1 + $0x8] sm:$0xff]  ;;  %v86_v4 = vmul.f32 0.5, %v82_v0  ;;  %v87_v5 = vmul.f32 0.5, %v83_v1 }
   0x3   :  { %v107_v6 = vadd.f32 %v85_v3, %v84_v2 }
   0x4   :  { %131 = vtanh.f32 %v86_v4 }
   0x5   :  { %133 = vtanh.f32 %v87_v5  ;;  %129 = vst [vmem:[%s173_s2 + $0x10] sm:$0xff] %v107_v6 }
   0xa   :  { %v132_v7 = vpop.eup %131 }
   0xb   :  { %v134_v8 = vpop.eup %133  ;;  %v90_v9 = vmul.f32 0.5, %v132_v7 }
   0xc   :  { %v91_v10 = vmul.f32 0.5, %v134_v8 }
   0xd   :  { %v92_v11 = vadd.f32 0.5, %v90_v9 }
   0xe   :  { %v93_v12 = vadd.f32 0.5, %v91_v10 }
   0xf   :  { %v95_v13 = vmul.f32 %v92_v11, %v84_v2 }
  0x10   :  { %v96_v14 = vmul.f32 %v93_v12, %v85_v3  ;;  %v102_v15 = vadd.f32 %v93_v12, %v92_v11 }
  0x12   :  { %v97_v16 = vadd.f32 %v96_v14, %v95_v13  ;;  %127 = vst [vmem:[%s173_s2 + $0x8] sm:$0xff] %v102_v15 }
  0x14   :  { %99 = vst [vmem:[%s173_s2] sm:$0xff] %v97_v16 }

</bundles_post_ra>
